<compile_context>
chip_gen: v6e
topology: v6e:2x2x1
jax: 0.10.0
libtpu: 0.0.40
codegen_flags: <defaults>
</compile_context>

<pallas_src>
import functools

import jax
import jax.numpy as jnp
from jax.experimental import pallas as pl
from jax.experimental.pallas import tpu as pltpu

LANES = 128
MAX_ROW_TILE = 4096            # (4096, 128) f32 = 2 MiB per stream per block
ALPHA = 0.25                   # alpha_t == 0.75 - 0.5 * t
GAMMA = 2.0                    # (1 - p_t) ** 2 implemented as q * q
_VMEM_LIMIT_BYTES = 32 * 1024 * 1024


def _focal_sum_kernel(x_ref, t_ref, out_ref, *,
                      need_mask, n_valid_last, use_logits_targets, approx):
    """Accumulate focal-loss partial sums of one chunk into out_ref (1,8,128)."""
    c = pl.program_id(0)           # parallel chunk (megacore split on v7x)
    i = pl.program_id(1)           # sequential step inside the chunk

    @pl.when(i == 0)
    def _init():
        out_ref[...] = jnp.zeros_like(out_ref)

    x = x_ref[...].astype(jnp.float32)
    t = t_ref[...].astype(jnp.float32)
    row_tile, lanes = x_ref.shape

    def recip(v):
        return pl.reciprocal(v, approx=True) if approx else 1.0 / v

    def stable_sigmoid(z):
        e = jnp.exp(-jnp.abs(z))           # one EUP exp, reused
        inv = recip(1.0 + e)               # EUP rcp (approx) instead of divide
        return e, jnp.where(z >= 0.0, inv, e * inv)

    if use_logits_targets:                 # FocalLoss(logits=True): targets.sigmoid()
        _, t = stable_sigmoid(t)

    e, p = stable_sigmoid(x)
    # numerically stable binary_cross_entropy_with_logits; log1p reuses exp
    ce = jnp.maximum(x, 0.0) - x * t + jnp.log1p(e)
    q = p + t * (1.0 - 2.0 * p)            # == 1 - p_t  (algebraic VALU cut)
    alpha_t = 0.75 - 0.5 * t               # == alpha*t + (1-alpha)*(1-t), alpha=0.25
    loss = (alpha_t * ce) * (q * q)        # gamma == 2

    def fold(v):                           # (row_tile,128) -> (1,8,128), pure VPU adds
        return v.reshape(row_tile // 8, 8, lanes).sum(axis=0)[None]

    if need_mask:
        is_last = jnp.logical_and(c == pl.num_programs(0) - 1,
                                  i == pl.num_programs(1) - 1)

        @pl.when(jnp.logical_not(is_last))
        def _hot():
            out_ref[...] += fold(loss)

        @pl.when(is_last)                  # only the globally-last tile has padding
        def _last():
            row_idx = jax.lax.broadcasted_iota(jnp.int32, (row_tile, lanes), 0)
            lane_idx = jax.lax.broadcasted_iota(jnp.int32, (row_tile, lanes), 1)
            local = row_idx * lanes + lane_idx          # tile-local index: no overflow
            out_ref[...] += fold(jnp.where(local < n_valid_last, loss, 0.0))
    else:
        out_ref[...] += fold(loss)


def _focal_partial_sum(x2, t2, row_tile, n_valid, logits, approx):
    """Sum of per-element focal losses over a (rows,128) slab (rows % row_tile == 0)."""
    rows = x2.shape[0]
    n_steps = rows // row_tile
    # 2-way TensorCore split when the step count allows it (worth ~2x on v7x,
    # neutral on v5e/v6e which have a single TC). Odd step counts fall back to 1.
    n_chunks = 2 if (n_steps >= 2 and n_steps % 2 == 0) else 1
    steps_per_chunk = n_steps // n_chunks
    need_mask = (n_valid != rows * LANES)
    n_valid_last = n_valid - (n_steps - 1) * row_tile * LANES

    kernel = functools.partial(
        _focal_sum_kernel,
        need_mask=need_mask,
        n_valid_last=n_valid_last,
        use_logits_targets=logits,
        approx=approx,
    )
    tile_spec = pl.BlockSpec((row_tile, LANES),
                             lambda c, i: (c * steps_per_chunk + i, 0))
    partials = pl.pallas_call(
        kernel,
        out_shape=jax.ShapeDtypeStruct((n_chunks, 8, LANES), jnp.float32),
        grid_spec=pltpu.PrefetchScalarGridSpec(
            num_scalar_prefetch=0,
            grid=(n_chunks, steps_per_chunk),
            in_specs=[tile_spec, tile_spec],
            out_specs=pl.BlockSpec((1, 8, LANES), lambda c, i: (c, 0, 0)),
        ),
        compiler_params=pltpu.CompilerParams(
            dimension_semantics=("parallel", "arbitrary"),
            vmem_limit_bytes=_VMEM_LIMIT_BYTES),
    )(x2, t2)
    return jnp.sum(partials)


def _round_up(v, m):
    return ((v + m - 1) // m) * m


def focal_loss(inputs, targets, *, logits=False, max_row_tile=MAX_ROW_TILE,
               approx_reciprocal=True):
    """Pallas equivalent of FocalLoss(logits=logits)(inputs, targets) (mean)."""
    assert inputs.shape == targets.shape
    n = int(inputs.size)
    assert n > 0

    x = inputs.reshape(-1)        # keep native dtype; cast to f32 inside the kernel
    t = targets.reshape(-1)

    rows8 = _round_up(-(-n // LANES), 8)
    row_tile = min(max_row_tile, rows8)
    tile_elems = row_tile * LANES

    total = jnp.zeros((), jnp.float32)

    # Tile-aligned prefix: processed with no padding and no extra copy.
    n_main = (n // tile_elems) * tile_elems
    if n_main > 0:
        x_main = x[:n_main].reshape(n_main // LANES, LANES)
        t_main = t[:n_main].reshape(n_main // LANES, LANES)
        total = total + _focal_partial_sum(x_main, t_main, row_tile, n_main,
                                           logits, approx_reciprocal)

    # Ragged tail (< one tile): tiny pad + single masked step.
    n_tail = n - n_main
    if n_tail > 0:
        tail_rows = _round_up(-(-n_tail // LANES), 8)
        pad = tail_rows * LANES - n_tail
        x_tail = jnp.pad(x[n_main:], (0, pad)).reshape(tail_rows, LANES)
        t_tail = jnp.pad(t[n_main:], (0, pad)).reshape(tail_rows, LANES)
        total = total + _focal_partial_sum(x_tail, t_tail, tail_rows, n_tail,
                                           logits, approx_reciprocal)

    return total / jnp.float32(n)


def _focal_loss_ref(inputs, targets, *, logits=False):
    """Pure-JAX reference (mirrors torchvision.ops.sigmoid_focal_loss, mean)."""
    x = inputs.astype(jnp.float32)
    t = targets.astype(jnp.float32)
    if logits:
        t = jax.nn.sigmoid(t)
    ce = jnp.maximum(x, 0.0) - x * t + jnp.log1p(jnp.exp(-jnp.abs(x)))
    p = jax.nn.sigmoid(x)
    p_t = p * t + (1.0 - p) * (1.0 - t)
    alpha_t = ALPHA * t + (1.0 - ALPHA) * (1.0 - t)
    loss = alpha_t * ce * (1.0 - p_t) ** GAMMA
    return jnp.mean(loss)


if __name__ == "__main__":
    key = jax.random.PRNGKey(0)
    k1, k2 = jax.random.split(key)
    # NCHW-shaped example inputs, consistent with a detection-style use.
    x = jax.random.normal(k1, (2, 4, 16, 16), dtype=jnp.float32)
    tgt = (jax.random.uniform(k2, (2, 4, 16, 16)) > 0.5).astype(jnp.float32)

    out = jax.block_until_ready(focal_loss(x, tgt, logits=False))
    ref = _focal_loss_ref(x, tgt, logits=False)
    # default path uses the EUP approx reciprocal (~1e-3..1e-4 rel error budget)
    assert jnp.allclose(out, ref, rtol=5e-3, atol=1e-5), (out, ref)

    # exact-divide path keeps the original tight tolerance
    out_exact = jax.block_until_ready(
        focal_loss(x, tgt, logits=False, approx_reciprocal=False))
    assert jnp.allclose(out_exact, ref, rtol=1e-5, atol=1e-6), (out_exact, ref)

    # ragged size + multi-step prefix (exercises the megacore split and the
    # masked tail call) + the logits=True target-sigmoid path.
    k3, k4 = jax.random.split(k1)
    x_b = jax.random.normal(k3, (3, 5, 17, 19), dtype=jnp.float32)   # 4845 elems
    t_b = jax.random.normal(k4, (3, 5, 17, 19), dtype=jnp.float32)
    out_b = jax.block_until_ready(
        focal_loss(x_b, t_b, logits=True, max_row_tile=16))
    ref_b = _focal_loss_ref(x_b, t_b, logits=True)
    assert jnp.allclose(out_b, ref_b, rtol=5e-3, atol=1e-5), (out_b, ref_b)

    print("KERNEL_OK")
</pallas_src>

<mosaic_0001>
module attributes {stable_mosaic.version = 11 : i64} {
  func.func @_focal_sum_kernel(%arg0: i32, %arg1: i32, %arg2: memref<16x128xf32, #tpu.memory_space<vmem>>, %arg3: memref<16x128xf32, #tpu.memory_space<vmem>>, %arg4: memref<1x8x128xf32, #tpu.memory_space<vmem>>) attributes {dimension_semantics = [#tpu.dimension_semantics<parallel>, #tpu.dimension_semantics<arbitrary>], iteration_bounds = array<i64: 1, 1>, scalar_prefetch = 0 : i64, scratch_operands = 0 : i64, tpu.core_type = #tpu.core_type<tc>, window_params = [{transform_indices = @transform_0, window_bounds = array<i64: 16, 128>}, {transform_indices = @transform_1, window_bounds = array<i64: 16, 128>}, {transform_indices = @transform_2, window_bounds = array<i64: 1, 8, 128>}]} {
    %c0_i32 = arith.constant 0 : i32
    %0 = arith.cmpi eq, %arg1, %c0_i32 : i32
    %1 = arith.extui %0 : i1 to i32
    %c0_i32_0 = arith.constant 0 : i32
    %2 = arith.cmpi ne, %1, %c0_i32_0 : i32
    scf.if %2 {
      %cst_18 = arith.constant 0.000000e+00 : f32
      %41 = vector.broadcast %cst_18 : f32 to vector<1x8x128xf32>
      %c0_19 = arith.constant 0 : index
      %c0_20 = arith.constant 0 : index
      %c0_21 = arith.constant 0 : index
      %42 = vector.load %arg4[%c0_19, %c0_20, %c0_21] : memref<1x8x128xf32, #tpu.memory_space<vmem>>, vector<1x8x128xf32>
      tpu.vector_store %arg4[%c0_19, %c0_20, %c0_21], %41 {strides = array<i32>} : memref<1x8x128xf32, #tpu.memory_space<vmem>>, vector<1x8x128xf32>,
    } else {
    }
    %c0 = arith.constant 0 : index
    %c0_1 = arith.constant 0 : index
    %3 = vector.load %arg2[%c0, %c0_1] : memref<16x128xf32, #tpu.memory_space<vmem>>, vector<16x128xf32>
    %c0_2 = arith.constant 0 : index
    %c0_3 = arith.constant 0 : index
    %4 = vector.load %arg3[%c0_2, %c0_3] : memref<16x128xf32, #tpu.memory_space<vmem>>, vector<16x128xf32>
    %5 = math.absf %3 : vector<16x128xf32>
    %cst = arith.constant 0.000000e+00 : f32
    %6 = vector.broadcast %cst : f32 to vector<16x128xf32>
    %7 = arith.subf %6, %5 : vector<16x128xf32>
    %8 = math.exp %7 : vector<16x128xf32>
    %cst_4 = arith.constant 1.000000e+00 : f32
    %9 = vector.broadcast %cst_4 : f32 to vector<16x128xf32>
    %10 = arith.addf %9, %8 : vector<16x128xf32>
    %11 = tpu.reciprocal %10 {approx = true} : vector<16x128xf32> -> vector<16x128xf32>
    %cst_5 = arith.constant 0.000000e+00 : f32
    %12 = vector.broadcast %cst_5 : f32 to vector<16x128xf32>
    %13 = arith.cmpf oge, %3, %12 : vector<16x128xf32>
    %14 = arith.mulf %8, %11 : vector<16x128xf32>
    %15 = arith.select %13, %11, %14 : vector<16x128xi1>, vector<16x128xf32>
    %cst_6 = arith.constant 0.000000e+00 : f32
    %16 = vector.broadcast %cst_6 : f32 to vector<16x128xf32>
    %17 = arith.maximumf %3, %16 : vector<16x128xf32>
    %18 = arith.mulf %3, %4 : vector<16x128xf32>
    %19 = arith.subf %17, %18 : vector<16x128xf32>
    %20 = math.log1p %8 : vector<16x128xf32>
    %21 = arith.addf %19, %20 : vector<16x128xf32>
    %cst_7 = arith.constant 2.000000e+00 : f32
    %22 = vector.broadcast %cst_7 : f32 to vector<16x128xf32>
    %23 = arith.mulf %22, %15 : vector<16x128xf32>
    %cst_8 = arith.constant 1.000000e+00 : f32
    %24 = vector.broadcast %cst_8 : f32 to vector<16x128xf32>
    %25 = arith.subf %24, %23 : vector<16x128xf32>
    %26 = arith.mulf %4, %25 : vector<16x128xf32>
    %27 = arith.addf %15, %26 : vector<16x128xf32>
    %cst_9 = arith.constant 5.000000e-01 : f32
    %28 = vector.broadcast %cst_9 : f32 to vector<16x128xf32>
    %29 = arith.mulf %28, %4 : vector<16x128xf32>
    %cst_10 = arith.constant 7.500000e-01 : f32
    %30 = vector.broadcast %cst_10 : f32 to vector<16x128xf32>
    %31 = arith.subf %30, %29 : vector<16x128xf32>
    %32 = arith.mulf %31, %21 : vector<16x128xf32>
    %33 = arith.mulf %27, %27 : vector<16x128xf32>
    %34 = arith.mulf %32, %33 : vector<16x128xf32>
    %c0_11 = arith.constant 0 : index
    %c0_12 = arith.constant 0 : index
    %c0_13 = arith.constant 0 : index
    %35 = vector.load %arg4[%c0_11, %c0_12, %c0_13] : memref<1x8x128xf32, #tpu.memory_space<vmem>>, vector<1x8x128xf32>
    %36 = vector.shape_cast %34 : vector<16x128xf32> to vector<2x8x128xf32>
    %cst_14 = arith.constant dense<0.000000e+00> : vector<8x128xf32>
    %37 = vector.multi_reduction <add>, %36, %cst_14 [0] : vector<2x8x128xf32> to vector<8x128xf32>
    %38 = vector.shape_cast %37 : vector<8x128xf32> to vector<1x8x128xf32>
    %39 = arith.addf %35, %38 : vector<1x8x128xf32>
    %c0_15 = arith.constant 0 : index
    %c0_16 = arith.constant 0 : index
    %c0_17 = arith.constant 0 : index
    %40 = vector.load %arg4[%c0_15, %c0_16, %c0_17] : memref<1x8x128xf32, #tpu.memory_space<vmem>>, vector<1x8x128xf32>
    tpu.vector_store %arg4[%c0_15, %c0_16, %c0_17], %39 {strides = array<i32>} : memref<1x8x128xf32, #tpu.memory_space<vmem>>, vector<1x8x128xf32>,
    return
  }
  func.func @transform_0(%arg0: i32, %arg1: i32) -> (i32, i32) {
    %c1_i32 = arith.constant 1 : i32
    %0 = arith.muli %arg0, %c1_i32 : i32
    %1 = arith.addi %0, %arg1 : i32
    %c0_i32 = arith.constant 0 : i32
    %c0_i32_0 = arith.constant 0 : i32
    return %1, %c0_i32 : i32, i32
  }
  func.func @transform_1(%arg0: i32, %arg1: i32) -> (i32, i32) {
    %c1_i32 = arith.constant 1 : i32
    %0 = arith.muli %arg0, %c1_i32 : i32
    %1 = arith.addi %0, %arg1 : i32
    %c0_i32 = arith.constant 0 : i32
    %c0_i32_0 = arith.constant 0 : i32
    return %1, %c0_i32 : i32, i32
  }
  func.func @transform_2(%arg0: i32, %arg1: i32) -> (i32, i32, i32) {
    %c0_i32 = arith.constant 0 : i32
    %c0_i32_0 = arith.constant 0 : i32
    %c0_i32_1 = arith.constant 0 : i32
    return %arg0, %c0_i32, %c0_i32_0 : i32, i32, i32
  }
}

</mosaic_0001>

<bundles_post_ra>
// kernel: tpu_custom_call.1
= control target key start
LH: loop header
LB: loop body
LE: loop exit
PB: predicated region body
PF: predicated region fallthrough
CT: control target
= control target key end

     0   :  { %7 = vsyncpa [#allocation3], 0  ;;  %s257_s0 = inlined_call_operand.hbm [shape: f32[16,128], index: 0, kind: input, shape index: {}]   ;;  %s258_s1 = inlined_call_operand.hbm [shape: f32[16,128], index: 1, kind: input, shape index: {}]   ;;  %s259_s2 = inlined_call_operand.hbm [shape: f32[1,8,128], index: 2, kind: output, shape index: {}]  }
   0x1   :  { %8 = vsyncpa [#allocation6], 0 }
   0x2   :  { %9 = vsyncpa [#allocation4], 0  ;;  %s227_s9 = smov [#allocation2]  }
   0x3   :  { %s19_s10 = sshll.u32 %s227_s9, 4  ;;  %s20_s10 = int_to_ptr.vmem [resolvable:$true] %s19_s10 }
   0x4   :  { %s169_s11 = scalar_lea.vmem %s20_s10, 256  ;;  %p174_p1 = scmp.lt.s32.totalorder %s20_s10, %s20_s10 }
   0x5   :  { %p170_p0 = scmp.ne.s32.totalorder %s20_s10, %s169_s11  ;;  %p175_p2 = scmp.lt.s32.totalorder %s169_s11, %s169_s11 }
   0x7   :  { %p176_p3 = por %p175_p2, %p174_p1 }
   0x9   :  { %p177_p4 = pnand %p176_p3, %p170_p0 }
   0xb   :  { %180 = shalt.err (!%p177_p4)
}
   0xc   :  { %s228_s12 = smov 128   ;;  %s229_s13 = smov 8  }
   0xd   :  { %25 = dma.hbm_to_vmem [thread:$0]  %s257_s0, 256, %s20_s10, [#allocation3], %s228_s12, %s228_s12, %s229_s13  }
   0xe   :  { %s230_s16 = smov [#allocation5]  }
   0xf   :  { %s35_s17 = sshll.u32 %s230_s16, 4  ;;  %s36_s17 = int_to_ptr.vmem [resolvable:$true] %s35_s17 }
  0x10   :  { %s189_s18 = scalar_lea.vmem %s36_s17, 256  ;;  %p194_p6 = scmp.lt.s32.totalorder %s36_s17, %s36_s17 }
  0x11   :  { %p190_p5 = scmp.ne.s32.totalorder %s36_s17, %s189_s18  ;;  %p195_p7 = scmp.lt.s32.totalorder %s189_s18, %s189_s18 }
  0x13   :  { %p196_p8 = por %p195_p7, %p194_p6 }
  0x15   :  { %p197_p9 = pnand %p196_p8, %p190_p5 }
  0x17   :  { %200 = shalt.err (!%p197_p9)
}
  0x18   :  { %41 = dma.hbm_to_vmem [thread:$0]  %s258_s1, 256, %s36_s17, [#allocation6], %s228_s12, %s228_s12, %s229_s13  }
  0x19   :  { %221 = dma.done.wait [#allocation3], 256  }
  0x1a   :  { %222 = vsyncadd [#allocation3], 4294967040 }
  0x1b   :  { %223 = dma.done.wait [#allocation6], 256  }
  0x1c   :  { %224 = vsyncadd [#allocation6], 4294967040  ;;  %v57_v0 = vld [vmem:[#allocation2] sm:$0xff]  ;;  %v58_v1 = vld [vmem:[#allocation2 + $0x8] sm:$0xff]  ;;  %s231_s0 = smov [#allocation7]  }
  0x1d   :  { %v61_v2 = vand.u32 2147483647, %v57_v0  ;;  %v62_v3 = vand.u32 2147483647, %v58_v1  ;;  %v59_v14 = vld [vmem:[#allocation5] sm:$0xff]  ;;  %v60_v15 = vld [vmem:[#allocation5 + $0x8] sm:$0xff] }
  0x1e   :  { %v79_v17 = vmax.f32 %v57_v0, 0.0  ;;  %v81_v18 = vmul.f32 %v59_v14, %v57_v0  ;;  %v80_v21 = vmax.f32 %v58_v1, 0.0  ;;  %v82_v22 = vmul.f32 %v60_v15, %v58_v1  ;;  %s133_s1 = sshll.u32 %s231_s0, 4  ;;  %s134_s1 = int_to_ptr.vmem [resolvable:$true] %s133_s1 }
  0x1f   :  { %v63_v4 = vsub.f32 0.0, %v61_v2  ;;  %v64_v5 = vsub.f32 0.0, %v62_v3  ;;  %vm73_vm0 = vcmp.ge.f32.partialorder %v57_v0, 0.0  ;;  %vm74_vm1 = vcmp.ge.f32.partialorder %v58_v1, 0.0  ;;  %s201_s21 = scalar_lea.vmem %s134_s1, 128  ;;  %p206_p11 = scmp.lt.s32.totalorder %s134_s1, %s134_s1 }
  0x20   :  { %v113_v28 = vmul.f32 0.5, %v59_v14  ;;  %v114_v29 = vmul.f32 0.5, %v60_v15  ;;  %v83_v32 = vsub.f32 %v79_v17, %v81_v18  ;;  %v84_v36 = vsub.f32 %v80_v21, %v82_v22  ;;  %p202_p10 = scmp.ne.s32.totalorder %s134_s1, %s201_s21  ;;  %p207_p12 = scmp.lt.s32.totalorder %s201_s21, %s201_s21 }
  0x21   :  { %v65_v6 = vmul.f32 1.442695, %v63_v4  ;;  %v67_v7 = vmul.f32 1.442695, %v64_v5 }
  0x22   :  { %v115_v46 = vsub.f32 0.75, %v113_v28  ;;  %v116_v49 = vsub.f32 0.75, %v114_v29  ;;  %p208_p13 = por %p207_p12, %p206_p11 }
  0x23   :  { %149 = vpow2.f32 %v65_v6 }
  0x24   :  { %151 = vpow2.f32 %v67_v7  ;;  %p209_p0 = pnand %p208_p13, %p202_p10 }
  0x30   :  { %v150_v8 = vpop.eup %149 }
  0x31   :  { %v152_v9 = vpop.eup %151  ;;  %v69_v10 = vadd.f32 1.0, %v150_v8  ;;  %v88_v12 = vmul.f32 -0.5, %v150_v8  ;;  %v91_v19 = vand.u32 2147483647, %v150_v8 }
  0x32   :  { %v70_v11 = vadd.f32 1.0, %v152_v9  ;;  %v97_v13 = vmul.f32 -0.5, %v152_v9  ;;  %v100_v23 = vand.u32 2147483647, %v152_v9 }
  0x33   :  { %153 = vrcp.f32 %v69_v10  ;;  %v89_v16 = vadd.f32 1.0, %v88_v12  ;;  %vm92_vm2 = vcmp.lt.f32.partialorder %v91_v19, 0.0004427343 }
  0x34   :  { %155 = vrcp.f32 %v70_v11  ;;  %v98_v20 = vadd.f32 1.0, %v97_v13  ;;  %vm101_vm3 = vcmp.lt.f32.partialorder %v100_v23, 0.0004427343 }
  0x35   :  { %157 = vlog2.f32 %v69_v10  ;;  %v90_v27 = vmul.f32 %v150_v8, %v89_v16 }
  0x36   :  { %159 = vlog2.f32 %v70_v11  ;;  %v99_v33 = vmul.f32 %v152_v9, %v98_v20 }
  0x40   :  { %v154_v24 = vpop.eup %153 }
  0x41   :  { %v156_v25 = vpop.eup %155  ;;  %v75_v26 = vmul.f32 %v154_v24, %v150_v8 }
  0x42   :  { %v158_v30 = vpop.eup %157  ;;  %v76_v31 = vmul.f32 %v156_v25, %v152_v9 }
  0x43   :  { %v160_v34 = vpop.eup %159  ;;  %v77_v35 = vsel %vm73_vm0, %v154_v24, %v75_v26  ;;  %v87_v37 = vmul.f32 0.6931472, %v158_v30 }
  0x44   :  { %v78_v38 = vsel %vm74_vm1, %v156_v25, %v76_v31  ;;  %v96_v39 = vmul.f32 0.6931472, %v160_v34  ;;  %v105_v40 = vmul.f32 2.0, %v77_v35 }
  0x45   :  { %v93_v41 = vsel %vm92_vm2, %v90_v27, %v87_v37  ;;  %v106_v42 = vmul.f32 2.0, %v78_v38 }
  0x46   :  { %v102_v43 = vsel %vm101_vm3, %v99_v33, %v96_v39  ;;  %v103_v44 = vadd.f32 %v93_v41, %v83_v32  ;;  %v107_v45 = vsub.f32 1.0, %v105_v40 }
  0x47   :  { %v104_v47 = vadd.f32 %v102_v43, %v84_v36  ;;  %v108_v48 = vsub.f32 1.0, %v106_v42 }
  0x48   :  { %v109_v50 = vmul.f32 %v107_v45, %v59_v14  ;;  %v117_v53 = vmul.f32 %v115_v46, %v103_v44 }
  0x49   :  { %v110_v51 = vmul.f32 %v108_v48, %v60_v15  ;;  %v118_v55 = vmul.f32 %v116_v49, %v104_v47 }
  0x4a   :  { %v111_v52 = vadd.f32 %v109_v50, %v77_v35 }
  0x4b   :  { %v112_v54 = vadd.f32 %v110_v51, %v78_v38 }
  0x4c   :  { %v119_v56 = vmul.f32 %v111_v52, %v111_v52 }
  0x4d   :  { %v120_v57 = vmul.f32 %v112_v54, %v112_v54 }
  0x4e   :  { %v121_v58 = vmul.f32 %v119_v56, %v117_v53 }
  0x4f   :  { %v122_v59 = vmul.f32 %v120_v57, %v118_v55 }
  0x51   :  { %v124_v60 = vadd.f32 %v122_v59, %v121_v58 }
  0x53   :  { %126 = vst [vmem:[#allocation7] sm:$0xff] %v124_v60 }
  0x54   :  { %212 = shalt.err (!%p209_p0)
}
  0x55   :  { %136 = dma.vmem_to_hbm [thread:$0]  %s134_s1, 128, %s259_s2, [#allocation4]  }
  0x56   :  { %225 = dma.done.wait [#allocation4], 128  }
  0x57   :  { %226 = vsyncadd [#allocation4], 4294967168 }
  0x58   :  { %140 = vsyncpa [#allocation3], 1 }
  0x59   :  { %141 = vsyncpa [#allocation6], 1 }
  0x5a   :  { %142 = vsyncpa [#allocation4], 1 }

</bundles_post_ra>
